<compile_context>
chip_gen: v7x
topology: tpu7x:2x2x1
jax: 0.10.0
libtpu: 0.0.40
codegen_flags: <defaults>
</compile_context>

<pallas_src>
import functools

import jax
import jax.numpy as jnp
import numpy as np
from jax.experimental import pallas as pl
from jax.experimental.pallas import tpu as pltpu

_LANES = 128
_NEG_INIT = -1e30   # finite "-inf": exp() underflows to exactly 0.


def _round_up(x, m):
    return ((x + m - 1) // m) * m


def _ce_kernel(target_ref, logits_ref, loss_ref,
               m_sc, s_sc, tgt_sc, *opt_scratch,
               vocab, tile_v, wide, has_tail, ignore_index,
               label_smoothing, lse_square_scale):
    """Online-logsumexp cross-entropy over vocab tiles (grid axis 1)."""
    sum_sc = opt_scratch[0] if opt_scratch else None   # only with smoothing
    j = pl.program_id(1)
    tile_b = m_sc.shape[0]

    @pl.when(j == 0)
    def _init():
        m_sc[...] = jnp.full_like(m_sc, _NEG_INIT)
        s_sc[...] = jnp.zeros_like(s_sc)
        tgt_sc[...] = jnp.zeros_like(tgt_sc)
        if sum_sc is not None:
            sum_sc[...] = jnp.zeros_like(sum_sc)

    tgt = target_ref[...]                                # (tile_b, 1) int32

    # ------------------------------------------------------------------
    # Wide path: tile_v is a multiple of 128.  Accumulators are
    # (tile_b, 128); per-tile work is purely elementwise folds over the
    # tile's 128-lane groups (no cross-lane XLU reduction in steady state).
    # ------------------------------------------------------------------
    def wide_update(mask_tail):
        n_groups = tile_v // _LANES
        col = jax.lax.broadcasted_iota(jnp.int32, (tile_b, _LANES), 1)
        base = j * tile_v                                # traced scalar
        tgt_local = tgt - base                           # (tile_b, 1)
        rem = vocab - base                               # valid lanes in tile

        def group(g):
            return logits_ref[:, pl.ds(g * _LANES, _LANES)].astype(jnp.float32)

        # pass 1: per-lane-position max of this tile (VPU max folds only).
        tmax = None
        for g in range(n_groups):
            xg = group(g)
            if mask_tail:
                xg = jnp.where(col < rem - g * _LANES, xg, _NEG_INIT)
            tmax = xg if tmax is None else jnp.maximum(tmax, xg)

        m_old = m_sc[...]
        m_new = jnp.maximum(m_old, tmax)
        s_acc = s_sc[...] * jnp.exp(m_old - m_new)
        tgt_acc = tgt_sc[...]
        sum_acc = sum_sc[...] if sum_sc is not None else None

        # pass 2: exp-sum / target gather / plain sum, all 128-lane wide.
        for g in range(n_groups):
            xg = group(g)
            if mask_tail:
                valid = col < rem - g * _LANES
                xe = jnp.where(valid, xg, _NEG_INIT)
            else:
                xe = xg
            s_acc = s_acc + jnp.exp(xe - m_new)
            # target index never matches out-of-vocab lanes (tgt < vocab) nor
            # a negative ignore_index, so no masking is needed here.
            tgt_acc = tgt_acc + jnp.where(col == tgt_local - g * _LANES, xg, 0.0)
            if sum_acc is not None:
                xs = jnp.where(valid, xg, 0.0) if mask_tail else xg
                sum_acc = sum_acc + xs

        m_sc[...] = m_new
        s_sc[...] = s_acc
        tgt_sc[...] = tgt_acc
        if sum_sc is not None:
            sum_sc[...] = sum_acc

    # ------------------------------------------------------------------
    # Narrow path: only used when the single vocab tile is the full vocab
    # and vocab is not a multiple of 128 (small / odd vocab).  Accumulators
    # are (tile_b, 1); full-axis reductions are fine here.
    # ------------------------------------------------------------------
    def narrow_update():
        x = logits_ref[...].astype(jnp.float32)          # (tile_b, vocab)
        col = jax.lax.broadcasted_iota(jnp.int32, x.shape, 1)
        m_old = m_sc[...]
        m_new = jnp.maximum(m_old, jnp.max(x, axis=-1, keepdims=True))
        s_sc[...] = (s_sc[...] * jnp.exp(m_old - m_new)
                     + jnp.sum(jnp.exp(x - m_new), axis=-1, keepdims=True))
        m_sc[...] = m_new
        tgt_sc[...] = tgt_sc[...] + jnp.sum(
            jnp.where(col == tgt, x, 0.0), axis=-1, keepdims=True)
        if sum_sc is not None:
            sum_sc[...] = sum_sc[...] + jnp.sum(x, axis=-1, keepdims=True)

    if wide:
        if has_tail:
            last = pl.num_programs(1) - 1

            @pl.when(j < last)
            def _interior():
                wide_update(False)          # unmasked fast path

            @pl.when(j == last)
            def _tail():
                wide_update(True)           # masked path, last tile only
        else:
            wide_update(False)
    else:
        narrow_update()

    # ------------------------------------------------------------------
    # Finalize: one cross-lane reduction per accumulator, then the loss.
    # ------------------------------------------------------------------
    @pl.when(j == pl.num_programs(1) - 1)
    def _finalize():
        m = m_sc[...]
        row_max = jnp.max(m, axis=-1, keepdims=True)
        lse = row_max + jnp.log(
            jnp.sum(s_sc[...] * jnp.exp(m - row_max), axis=-1, keepdims=True))
        z = jnp.sum(tgt_sc[...], axis=-1, keepdims=True)
        loss = lse - (1.0 - label_smoothing) * z
        if lse_square_scale != 0.0:
            loss = loss + lse_square_scale * lse * lse
        if sum_sc is not None:
            loss = loss - (label_smoothing / vocab) * jnp.sum(
                sum_sc[...], axis=-1, keepdims=True)
        loss = jnp.where(tgt == ignore_index, 0.0, loss)
        loss_ref[...] = loss


def cross_entropy_losses(logits, target, *, ignore_index=-100,
                         label_smoothing=0.0, lse_square_scale=0.0,
                         tile_b=256, tile_v=8192):
    """Per-row losses, shape (batch,), float32. Hot path runs in Pallas."""
    batch, vocab = logits.shape
    itemsize = int(jnp.dtype(logits.dtype).itemsize)
    sub = max(8, 8 * (4 // max(1, itemsize)))   # f32 -> 8, bf16 -> 16, i8 -> 32

    # ---- batch tile -----------------------------------------------------
    if batch <= sub:
        tb = batch                               # full dim: any size is legal
    else:
        tb = max(sub, (min(tile_b, batch) // sub) * sub)
        # keep >= 2 batch grid steps so both v7x TensorCores get work
        # (harmless on single-TC v5e/v6e).
        tb = min(tb, _round_up(pl.cdiv(batch, 2), sub))

    # ---- vocab tile: as large as the VMEM budget allows -----------------
    # Budget the *double-buffered* native-dtype block; the kernel streams
    # 128-lane groups straight from the block so there is no full f32 copy.
    blk_budget = 24 << 20
    cap_v = max(_LANES, (blk_budget // (2 * tb * itemsize)) // _LANES * _LANES)
    tv = min(tile_v, cap_v)
    if vocab <= tv:
        tv = vocab                               # full dim: any size is legal
    else:
        tv = max(_LANES, (tv // _LANES) * _LANES)
        # Prefer a tile that divides vocab exactly so no tail masking is
        # emitted at all; accept it only if it is at least half the cap.
        if vocab % _LANES == 0:
            q = vocab // _LANES
            for d in range(tv // _LANES, 0, -1):
                if q % d == 0:
                    if d * _LANES * 2 >= tv:
                        tv = d * _LANES
                    break

    n_b = pl.cdiv(batch, tb)
    n_v = pl.cdiv(vocab, tv)
    wide = (tv % _LANES == 0)
    has_tail = (vocab % tv) != 0
    assert wide or n_v == 1                      # narrow path => single tile
    smoothing = float(label_smoothing) != 0.0
    acc_w = _LANES if wide else 1

    target2d = target.astype(jnp.int32).reshape(batch, 1)

    kernel = functools.partial(
        _ce_kernel,
        vocab=int(vocab),
        tile_v=int(tv),
        wide=bool(wide),
        has_tail=bool(has_tail),
        ignore_index=int(ignore_index),
        label_smoothing=float(label_smoothing),
        lse_square_scale=float(lse_square_scale),
    )

    scratch_shapes = [pltpu.VMEM((tb, acc_w), jnp.float32)   # running max
                      for _ in range(3)]                      # + exp-sum + tgt
    if smoothing:
        scratch_shapes.append(pltpu.VMEM((tb, acc_w), jnp.float32))  # sum(x)

    block_bytes = tb * tv * itemsize
    acc_bytes = len(scratch_shapes) * tb * acc_w * 4
    # explicit scoped-VMEM limit: default is only 16 MiB on v5e; keep total
    # <= 48 MiB so it also fits v7x's 64 MiB physical VMEM.
    vmem_limit = int(min(48 << 20,
                         max(16 << 20, 2 * block_bytes + acc_bytes + (6 << 20))))

    cost = pl.CostEstimate(
        flops=8 * batch * vocab,
        transcendentals=batch * vocab,
        bytes_accessed=batch * vocab * itemsize + batch * 8)

    losses = pl.pallas_call(
        kernel,
        out_shape=jax.ShapeDtypeStruct((batch, 1), jnp.float32),
        grid_spec=pltpu.PrefetchScalarGridSpec(
            num_scalar_prefetch=0,
            grid=(n_b, n_v),                     # vocab (reduction) axis last
            in_specs=[
                pl.BlockSpec((tb, 1), lambda i, j: (i, 0)),      # targets
                pl.BlockSpec((tb, tv), lambda i, j: (i, j)),     # logits
            ],
            out_specs=pl.BlockSpec((tb, 1), lambda i, j: (i, 0)),
            scratch_shapes=scratch_shapes,
        ),
        compiler_params=pltpu.CompilerParams(
            dimension_semantics=("parallel", "arbitrary"),
            vmem_limit_bytes=vmem_limit),
        cost_estimate=cost,
    )(target2d, logits)
    return losses.reshape(batch)


class CrossEntropyLoss:
    """JAX/Pallas mirror of flash_attn.losses.cross_entropy.CrossEntropyLoss."""

    def __init__(self, ignore_index=-100, reduction="mean",
                 label_smoothing=0.0, lse_square_scale=0.0,
                 inplace_backward=False, process_group=None):
        if reduction not in ["mean", "none", "sum"]:
            raise NotImplementedError(
                "Only support reduction = 'mean' or 'none' or 'sum'")
        # TODO(synk): process_group (tensor-parallel vocab split) and the
        # in-place backward pass are not implemented; forward only.
        self.ignore_index = ignore_index
        self.reduction = reduction
        self.label_smoothing = label_smoothing
        self.lse_square_scale = lse_square_scale

    def __call__(self, input, target):
        loss = cross_entropy_losses(
            input, target,
            ignore_index=self.ignore_index,
            label_smoothing=self.label_smoothing,
            lse_square_scale=self.lse_square_scale,
        )
        if self.reduction == "mean":
            # NB: NaN if every target is ignore_index (matches PyTorch).
            denom = jnp.sum(target != self.ignore_index).astype(jnp.float32)
            return loss.sum() / denom
        elif self.reduction == "sum":
            return loss.sum()
        else:
            return loss


def _reference(logits, target, ignore_index, label_smoothing, lse_square_scale):
    logits = logits.astype(jnp.float32)
    vocab = logits.shape[1]
    lse = jax.scipy.special.logsumexp(logits, axis=-1)
    tgt_clamped = jnp.clip(target, 0, vocab - 1)
    z_label = jnp.take_along_axis(logits, tgt_clamped[:, None], axis=-1)[:, 0]
    loss = (lse + lse_square_scale * lse * lse
            - (1.0 - label_smoothing) * z_label
            - label_smoothing * jnp.sum(logits, axis=-1) / vocab)
    return jnp.where(target == ignore_index, 0.0, loss)


if __name__ == "__main__":
    key = jax.random.PRNGKey(0)
    ks = jax.random.split(key, 8)
    ii = -100

    # Case 1: f32, label smoothing + z-loss, single vocab tile (wide path).
    batch, vocab = 8, 512
    logits = jax.random.normal(ks[0], (batch, vocab), dtype=jnp.float32)
    target = jax.random.randint(ks[1], (batch,), 0, vocab, dtype=jnp.int32)
    target = target.at[3].set(ii)
    ls, zs = 0.1, 1e-4
    mod_none = CrossEntropyLoss(ignore_index=ii, reduction="none",
                                label_smoothing=ls, lse_square_scale=zs)
    out = jax.block_until_ready(mod_none(logits, target))
    ref = _reference(logits, target, ii, ls, zs)
    np.testing.assert_allclose(np.asarray(out), np.asarray(ref),
                               rtol=1e-5, atol=1e-5)
    mod_mean = CrossEntropyLoss(ignore_index=ii, reduction="mean",
                                label_smoothing=ls, lse_square_scale=zs)
    mean_loss = jax.block_until_ready(mod_mean(logits, target))
    ref_mean = ref.sum() / jnp.sum(target != ii).astype(jnp.float32)
    np.testing.assert_allclose(np.asarray(mean_loss), np.asarray(ref_mean),
                               rtol=1e-5, atol=1e-5)

    # Case 2: bf16, vocab not divisible by the vocab tile -> multi-tile wide
    # path with the pl.when-gated tail mask on the last (partial) tile.
    batch2, vocab2 = 16, 608
    logits2 = jax.random.normal(ks[2], (batch2, vocab2),
                                dtype=jnp.float32).astype(jnp.bfloat16)
    target2 = jax.random.randint(ks[3], (batch2,), 0, vocab2, dtype=jnp.int32)
    target2 = target2.at[0].set(ii)
    out2 = jax.block_until_ready(
        cross_entropy_losses(logits2, target2, ignore_index=ii, tile_v=256))
    ref2 = _reference(logits2, target2, ii, 0.0, 0.0)
    np.testing.assert_allclose(np.asarray(out2), np.asarray(ref2),
                               rtol=1e-4, atol=1e-4)

    # Case 3: odd batch (partial batch block) + vocab not a multiple of 128
    # (narrow single-tile path).
    batch3, vocab3 = 13, 200
    logits3 = jax.random.normal(ks[4], (batch3, vocab3), dtype=jnp.float32)
    target3 = jax.random.randint(ks[5], (batch3,), 0, vocab3, dtype=jnp.int32)
    target3 = target3.at[5].set(ii)
    out3 = jax.block_until_ready(
        CrossEntropyLoss(ignore_index=ii, reduction="none")(logits3, target3))
    ref3 = _reference(logits3, target3, ii, 0.0, 0.0)
    np.testing.assert_allclose(np.asarray(out3), np.asarray(ref3),
                               rtol=1e-5, atol=1e-5)

    # Case 4: bf16, multi-tile wide path with an exactly-dividing vocab tile,
    # label smoothing enabled, batch split across 2 grid steps.
    batch4, vocab4 = 32, 1024
    logits4 = jax.random.normal(ks[6], (batch4, vocab4),
                                dtype=jnp.float32).astype(jnp.bfloat16)
    target4 = jax.random.randint(ks[7], (batch4,), 0, vocab4, dtype=jnp.int32)
    target4 = target4.at[7].set(ii)
    out4 = jax.block_until_ready(
        cross_entropy_losses(logits4, target4, ignore_index=ii,
                             label_smoothing=0.1, tile_v=256))
    ref4 = _reference(logits4, target4, ii, 0.1, 0.0)
    np.testing.assert_allclose(np.asarray(out4), np.asarray(ref4),
                               rtol=1e-4, atol=1e-4)

    print("KERNEL_OK")
</pallas_src>

<mosaic_0001>
module attributes {stable_mosaic.version = 11 : i64} {
  func.func @_ce_kernel(%arg0: i32, %arg1: i32, %arg2: memref<8x1xi32, #tpu.memory_space<vmem>>, %arg3: memref<8x512xf32, #tpu.memory_space<vmem>>, %arg4: memref<8x1xf32, #tpu.memory_space<vmem>>, %arg5: memref<8x128xf32, #tpu.memory_space<vmem>>, %arg6: memref<8x128xf32, #tpu.memory_space<vmem>>, %arg7: memref<8x128xf32, #tpu.memory_space<vmem>>, %arg8: memref<8x128xf32, #tpu.memory_space<vmem>>) attributes {dimension_semantics = [#tpu.dimension_semantics<parallel>, #tpu.dimension_semantics<arbitrary>], iteration_bounds = array<i64: 1, 1>, scalar_prefetch = 0 : i64, scratch_operands = 4 : i64, tpu.core_type = #tpu.core_type<tc>, window_params = [{transform_indices = @transform_0, window_bounds = array<i64: 8, 1>}, {transform_indices = @transform_1, window_bounds = array<i64: 8, 512>}, {transform_indices = @transform_2, window_bounds = array<i64: 8, 1>}]} {
    %c0_i32 = arith.constant 0 : i32
    %0 = arith.cmpi eq, %arg1, %c0_i32 : i32
    %1 = arith.extui %0 : i1 to i32
    %c0_i32_0 = arith.constant 0 : i32
    %2 = arith.cmpi ne, %1, %c0_i32_0 : i32
    scf.if %2 {
      %cst_37 = arith.constant -1.000000e+30 : f32
      %78 = vector.broadcast %cst_37 : f32 to vector<8x128xf32>
      %c0_38 = arith.constant 0 : index
      %c0_39 = arith.constant 0 : index
      %79 = vector.load %arg5[%c0_38, %c0_39] : memref<8x128xf32, #tpu.memory_space<vmem>>, vector<8x128xf32>
      tpu.vector_store %arg5[%c0_38, %c0_39], %78 {strides = array<i32>} : memref<8x128xf32, #tpu.memory_space<vmem>>, vector<8x128xf32>,
      %cst_40 = arith.constant 0.000000e+00 : f32
      %80 = vector.broadcast %cst_40 : f32 to vector<8x128xf32>
      %c0_41 = arith.constant 0 : index
      %c0_42 = arith.constant 0 : index
      %81 = vector.load %arg6[%c0_41, %c0_42] : memref<8x128xf32, #tpu.memory_space<vmem>>, vector<8x128xf32>
      tpu.vector_store %arg6[%c0_41, %c0_42], %80 {strides = array<i32>} : memref<8x128xf32, #tpu.memory_space<vmem>>, vector<8x128xf32>,
      %cst_43 = arith.constant 0.000000e+00 : f32
      %82 = vector.broadcast %cst_43 : f32 to vector<8x128xf32>
      %c0_44 = arith.constant 0 : index
      %c0_45 = arith.constant 0 : index
      %83 = vector.load %arg7[%c0_44, %c0_45] : memref<8x128xf32, #tpu.memory_space<vmem>>, vector<8x128xf32>
      tpu.vector_store %arg7[%c0_44, %c0_45], %82 {strides = array<i32>} : memref<8x128xf32, #tpu.memory_space<vmem>>, vector<8x128xf32>,
      %cst_46 = arith.constant 0.000000e+00 : f32
      %84 = vector.broadcast %cst_46 : f32 to vector<8x128xf32>
      %c0_47 = arith.constant 0 : index
      %c0_48 = arith.constant 0 : index
      %85 = vector.load %arg8[%c0_47, %c0_48] : memref<8x128xf32, #tpu.memory_space<vmem>>, vector<8x128xf32>
      tpu.vector_store %arg8[%c0_47, %c0_48], %84 {strides = array<i32>} : memref<8x128xf32, #tpu.memory_space<vmem>>, vector<8x128xf32>,
    } else {
    }
    %c0 = arith.constant 0 : index
    %c0_1 = arith.constant 0 : index
    %3 = vector.load %arg2[%c0, %c0_1] : memref<8x1xi32, #tpu.memory_space<vmem>>, vector<8x1xi32>
    %4 = tpu.iota {dimensions = array<i32: 1>} : vector<8x128xi32>
    %c512_i32 = arith.constant 512 : i32
    %5 = arith.muli %arg1, %c512_i32 : i32
    %6 = vector.broadcast %5 : i32 to vector<8x1xi32>
    %7 = arith.subi %3, %6 : vector<8x1xi32>
    %c0_2 = arith.constant 0 : index
    %c0_3 = arith.constant 0 : index
    %8 = vector.load %arg3[%c0_2, %c0_3] : memref<8x512xf32, #tpu.memory_space<vmem>>, vector<8x128xf32>
    %c0_4 = arith.constant 0 : index
    %c128 = arith.constant 128 : index
    %9 = vector.load %arg3[%c0_4, %c128] : memref<8x512xf32, #tpu.memory_space<vmem>>, vector<8x128xf32>
    %10 = arith.maximumf %8, %9 : vector<8x128xf32>
    %c0_5 = arith.constant 0 : index
    %c256 = arith.constant 256 : index
    %11 = vector.load %arg3[%c0_5, %c256] : memref<8x512xf32, #tpu.memory_space<vmem>>, vector<8x128xf32>
    %12 = arith.maximumf %10, %11 : vector<8x128xf32>
    %c0_6 = arith.constant 0 : index
    %c384 = arith.constant 384 : index
    %13 = vector.load %arg3[%c0_6, %c384] : memref<8x512xf32, #tpu.memory_space<vmem>>, vector<8x128xf32>
    %14 = arith.maximumf %12, %13 : vector<8x128xf32>
    %c0_7 = arith.constant 0 : index
    %c0_8 = arith.constant 0 : index
    %15 = vector.load %arg5[%c0_7, %c0_8] : memref<8x128xf32, #tpu.memory_space<vmem>>, vector<8x128xf32>
    %16 = arith.maximumf %15, %14 : vector<8x128xf32>
    %c0_9 = arith.constant 0 : index
    %c0_10 = arith.constant 0 : index
    %17 = vector.load %arg6[%c0_9, %c0_10] : memref<8x128xf32, #tpu.memory_space<vmem>>, vector<8x128xf32>
    %18 = arith.subf %15, %16 : vector<8x128xf32>
    %19 = math.exp %18 : vector<8x128xf32>
    %20 = arith.mulf %17, %19 : vector<8x128xf32>
    %c0_11 = arith.constant 0 : index
    %c0_12 = arith.constant 0 : index
    %21 = vector.load %arg7[%c0_11, %c0_12] : memref<8x128xf32, #tpu.memory_space<vmem>>, vector<8x128xf32>
    %c0_13 = arith.constant 0 : index
    %c0_14 = arith.constant 0 : index
    %22 = vector.load %arg8[%c0_13, %c0_14] : memref<8x128xf32, #tpu.memory_space<vmem>>, vector<8x128xf32>
    %c0_15 = arith.constant 0 : index
    %c0_16 = arith.constant 0 : index
    %23 = vector.load %arg3[%c0_15, %c0_16] : memref<8x512xf32, #tpu.memory_space<vmem>>, vector<8x128xf32>
    %24 = arith.subf %23, %16 : vector<8x128xf32>
    %25 = math.exp %24 : vector<8x128xf32>
    %26 = arith.addf %20, %25 : vector<8x128xf32>
    %c0_i32_17 = arith.constant 0 : i32
    %27 = vector.broadcast %c0_i32_17 : i32 to vector<8x1xi32>
    %28 = arith.subi %7, %27 : vector<8x1xi32>
    %29 = vector.broadcast %28 : vector<8x1xi32> to vector<8x128xi32>
    %30 = arith.cmpi eq, %4, %29 : vector<8x128xi32>
    %cst = arith.constant 0.000000e+00 : f32
    %31 = vector.broadcast %cst : f32 to vector<8x128xf32>
    %32 = arith.select %30, %23, %31 : vector<8x128xi1>, vector<8x128xf32>
    %33 = arith.addf %21, %32 : vector<8x128xf32>
    %34 = arith.addf %22, %23 : vector<8x128xf32>
    %c0_18 = arith.constant 0 : index
    %c128_19 = arith.constant 128 : index
    %35 = vector.load %arg3[%c0_18, %c128_19] : memref<8x512xf32, #tpu.memory_space<vmem>>, vector<8x128xf32>
    %36 = arith.subf %35, %16 : vector<8x128xf32>
    %37 = math.exp %36 : vector<8x128xf32>
    %38 = arith.addf %26, %37 : vector<8x128xf32>
    %c128_i32 = arith.constant 128 : i32
    %39 = vector.broadcast %c128_i32 : i32 to vector<8x1xi32>
    %40 = arith.subi %7, %39 : vector<8x1xi32>
    %41 = vector.broadcast %40 : vector<8x1xi32> to vector<8x128xi32>
    %42 = arith.cmpi eq, %4, %41 : vector<8x128xi32>
    %cst_20 = arith.constant 0.000000e+00 : f32
    %43 = vector.broadcast %cst_20 : f32 to vector<8x128xf32>
    %44 = arith.select %42, %35, %43 : vector<8x128xi1>, vector<8x128xf32>
    %45 = arith.addf %33, %44 : vector<8x128xf32>
    %46 = arith.addf %34, %35 : vector<8x128xf32>
    %c0_21 = arith.constant 0 : index
    %c256_22 = arith.constant 256 : index
    %47 = vector.load %arg3[%c0_21, %c256_22] : memref<8x512xf32, #tpu.memory_space<vmem>>, vector<8x128xf32>
    %48 = arith.subf %47, %16 : vector<8x128xf32>
    %49 = math.exp %48 : vector<8x128xf32>
    %50 = arith.addf %38, %49 : vector<8x128xf32>
    %c256_i32 = arith.constant 256 : i32
    %51 = vector.broadcast %c256_i32 : i32 to vector<8x1xi32>
    %52 = arith.subi %7, %51 : vector<8x1xi32>
    %53 = vector.broadcast %52 : vector<8x1xi32> to vector<8x128xi32>
    %54 = arith.cmpi eq, %4, %53 : vector<8x128xi32>
    %cst_23 = arith.constant 0.000000e+00 : f32
    %55 = vector.broadcast %cst_23 : f32 to vector<8x128xf32>
    %56 = arith.select %54, %47, %55 : vector<8x128xi1>, vector<8x128xf32>
    %57 = arith.addf %45, %56 : vector<8x128xf32>
    %58 = arith.addf %46, %47 : vector<8x128xf32>
    %c0_24 = arith.constant 0 : index
    %c384_25 = arith.constant 384 : index
    %59 = vector.load %arg3[%c0_24, %c384_25] : memref<8x512xf32, #tpu.memory_space<vmem>>, vector<8x128xf32>
    %60 = arith.subf %59, %16 : vector<8x128xf32>
    %61 = math.exp %60 : vector<8x128xf32>
    %62 = arith.addf %50, %61 : vector<8x128xf32>
    %c384_i32 = arith.constant 384 : i32
    %63 = vector.broadcast %c384_i32 : i32 to vector<8x1xi32>
    %64 = arith.subi %7, %63 : vector<8x1xi32>
    %65 = vector.broadcast %64 : vector<8x1xi32> to vector<8x128xi32>
    %66 = arith.cmpi eq, %4, %65 : vector<8x128xi32>
    %cst_26 = arith.constant 0.000000e+00 : f32
    %67 = vector.broadcast %cst_26 : f32 to vector<8x128xf32>
    %68 = arith.select %66, %59, %67 : vector<8x128xi1>, vector<8x128xf32>
    %69 = arith.addf %57, %68 : vector<8x128xf32>
    %70 = arith.addf %58, %59 : vector<8x128xf32>
    %c0_27 = arith.constant 0 : index
    %c0_28 = arith.constant 0 : index
    %71 = vector.load %arg5[%c0_27, %c0_28] : memref<8x128xf32, #tpu.memory_space<vmem>>, vector<8x128xf32>
    tpu.vector_store %arg5[%c0_27, %c0_28], %16 {strides = array<i32>} : memref<8x128xf32, #tpu.memory_space<vmem>>, vector<8x128xf32>,
    %c0_29 = arith.constant 0 : index
    %c0_30 = arith.constant 0 : index
    %72 = vector.load %arg6[%c0_29, %c0_30] : memref<8x128xf32, #tpu.memory_space<vmem>>, vector<8x128xf32>
    tpu.vector_store %arg6[%c0_29, %c0_30], %62 {strides = array<i32>} : memref<8x128xf32, #tpu.memory_space<vmem>>, vector<8x128xf32>,
    %c0_31 = arith.constant 0 : index
    %c0_32 = arith.constant 0 : index
    %73 = vector.load %arg7[%c0_31, %c0_32] : memref<8x128xf32, #tpu.memory_space<vmem>>, vector<8x128xf32>
    tpu.vector_store %arg7[%c0_31, %c0_32], %69 {strides = array<i32>} : memref<8x128xf32, #tpu.memory_space<vmem>>, vector<8x128xf32>,
    %c0_33 = arith.constant 0 : index
    %c0_34 = arith.constant 0 : index
    %74 = vector.load %arg8[%c0_33, %c0_34] : memref<8x128xf32, #tpu.memory_space<vmem>>, vector<8x128xf32>
    tpu.vector_store %arg8[%c0_33, %c0_34], %70 {strides = array<i32>} : memref<8x128xf32, #tpu.memory_space<vmem>>, vector<8x128xf32>,
    %c0_i32_35 = arith.constant 0 : i32
    %75 = arith.cmpi eq, %arg1, %c0_i32_35 : i32
    %76 = arith.extui %75 : i1 to i32
    %c0_i32_36 = arith.constant 0 : i32
    %77 = arith.cmpi ne, %76, %c0_i32_36 : i32
    scf.if %77 {
      %c0_37 = arith.constant 0 : index
      %c0_38 = arith.constant 0 : index
      %78 = vector.load %arg5[%c0_37, %c0_38] : memref<8x128xf32, #tpu.memory_space<vmem>>, vector<8x128xf32>
      %cst_39 = arith.constant dense<0xFF800000> : vector<8xf32>
      %79 = vector.multi_reduction <maximumf>, %78, %cst_39 [1] : vector<8x128xf32> to vector<8xf32>
      %80 = vector.shape_cast %79 : vector<8xf32> to vector<8x1xf32>
      %c0_40 = arith.constant 0 : index
      %c0_41 = arith.constant 0 : index
      %81 = vector.load %arg6[%c0_40, %c0_41] : memref<8x128xf32, #tpu.memory_space<vmem>>, vector<8x128xf32>
      %82 = vector.broadcast %80 : vector<8x1xf32> to vector<8x128xf32>
      %83 = arith.subf %78, %82 : vector<8x128xf32>
      %84 = math.exp %83 : vector<8x128xf32>
      %85 = arith.mulf %81, %84 : vector<8x128xf32>
      %cst_42 = arith.constant dense<0.000000e+00> : vector<8xf32>
      %86 = vector.multi_reduction <add>, %85, %cst_42 [1] : vector<8x128xf32> to vector<8xf32>
      %87 = vector.shape_cast %86 : vector<8xf32> to vector<8x1xf32>
      %88 = math.log %87 : vector<8x1xf32>
      %89 = arith.addf %80, %88 : vector<8x1xf32>
      %c0_43 = arith.constant 0 : index
      %c0_44 = arith.constant 0 : index
      %90 = vector.load %arg7[%c0_43, %c0_44] : memref<8x128xf32, #tpu.memory_space<vmem>>, vector<8x128xf32>
      %cst_45 = arith.constant dense<0.000000e+00> : vector<8xf32>
      %91 = vector.multi_reduction <add>, %90, %cst_45 [1] : vector<8x128xf32> to vector<8xf32>
      %92 = vector.shape_cast %91 : vector<8xf32> to vector<8x1xf32>
      %cst_46 = arith.constant 0.899999976 : f32
      %93 = vector.broadcast %cst_46 : f32 to vector<8x1xf32>
      %94 = arith.mulf %93, %92 : vector<8x1xf32>
      %95 = arith.subf %89, %94 : vector<8x1xf32>
      %cst_47 = arith.constant 9.99999974E-5 : f32
      %96 = vector.broadcast %cst_47 : f32 to vector<8x1xf32>
      %97 = arith.mulf %96, %89 : vector<8x1xf32>
      %98 = arith.mulf %97, %89 : vector<8x1xf32>
      %99 = arith.addf %95, %98 : vector<8x1xf32>
      %c0_48 = arith.constant 0 : index
      %c0_49 = arith.constant 0 : index
      %100 = vector.load %arg8[%c0_48, %c0_49] : memref<8x128xf32, #tpu.memory_space<vmem>>, vector<8x128xf32>
      %cst_50 = arith.constant dense<0.000000e+00> : vector<8xf32>
      %101 = vector.multi_reduction <add>, %100, %cst_50 [1] : vector<8x128xf32> to vector<8xf32>
      %102 = vector.shape_cast %101 : vector<8xf32> to vector<8x1xf32>
      %cst_51 = arith.constant 1.95312503E-4 : f32
      %103 = vector.broadcast %cst_51 : f32 to vector<8x1xf32>
      %104 = arith.mulf %103, %102 : vector<8x1xf32>
      %105 = arith.subf %99, %104 : vector<8x1xf32>
      %c-100_i32 = arith.constant -100 : i32
      %106 = vector.broadcast %c-100_i32 : i32 to vector<8x1xi32>
      %107 = arith.cmpi eq, %3, %106 : vector<8x1xi32>
      %cst_52 = arith.constant 0.000000e+00 : f32
      %108 = vector.broadcast %cst_52 : f32 to vector<8x1xf32>
      %109 = arith.select %107, %108, %105 : vector<8x1xi1>, vector<8x1xf32>
      %c0_53 = arith.constant 0 : index
      %c0_54 = arith.constant 0 : index
      %110 = vector.load %arg4[%c0_53, %c0_54] : memref<8x1xf32, #tpu.memory_space<vmem>>, vector<8x1xf32>
      tpu.vector_store %arg4[%c0_53, %c0_54], %109 {strides = array<i32>} : memref<8x1xf32, #tpu.memory_space<vmem>>, vector<8x1xf32>,
    } else {
    }
    return
  }
  func.func @transform_0(%arg0: i32, %arg1: i32) -> (i32, i32) {
    %c0_i32 = arith.constant 0 : i32
    %c0_i32_0 = arith.constant 0 : i32
    return %arg0, %c0_i32 : i32, i32
  }
  func.func @transform_1(%arg0: i32, %arg1: i32) -> (i32, i32) {
    %c0_i32 = arith.constant 0 : i32
    return %arg0, %arg1 : i32, i32
  }
  func.func @transform_2(%arg0: i32, %arg1: i32) -> (i32, i32) {
    %c0_i32 = arith.constant 0 : i32
    %c0_i32_0 = arith.constant 0 : i32
    return %arg0, %c0_i32 : i32, i32
  }
}

</mosaic_0001>

<bundles_post_ra>
// kernel: tpu_custom_call.1
= control target key start
LH: loop header
LB: loop body
LE: loop exit
PB: predicated region body
PF: predicated region fallthrough
CT: control target
= control target key end

     0   :  { %7 = vsyncpa [#allocation7], 0  ;;  %s187_s9 = smov [#allocation6]   ;;  %s235_s0 = inlined_call_operand.vmem [shape: s32[8,1], index: 0, kind: input, shape index: {}]   ;;  %s236_s1 = inlined_call_operand.hbm [shape: f32[8,512], index: 1, kind: input, shape index: {}]   ;;  %s237_s2 = inlined_call_operand.vmem [shape: f32[8,1], index: 2, kind: output, shape index: {}]  }
   0x1   :  { %s16_s10 = sshll.u32 %s187_s9, 4  ;;  %s163_s13 = scalar_lea.hbm %s236_s1, 512  ;;  %s17_s10 = int_to_ptr.vmem [resolvable:$true] %s16_s10 }
   0x2   :  { %p164_p0 = scmp.ne.s32.totalorder %s236_s1, %s163_s13  ;;  %p167_p1 = scmp.lt.u32.totalorder %s163_s13, %s236_s1 }
   0x4   :  { %p169_p2 = pnand %p167_p1, %p164_p0 }
   0x6   :  { %172 = shalt.err (!%p169_p2)
}
   0x7   :  { %s173_s18 = scalar_lea.vmem %s17_s10, 512  ;;  %p178_p4 = scmp.lt.s32.totalorder %s17_s10, %s17_s10 }
   0x8   :  { %p174_p3 = scmp.ne.s32.totalorder %s17_s10, %s173_s18  ;;  %p179_p5 = scmp.lt.s32.totalorder %s173_s18, %s173_s18 }
   0xa   :  { %p180_p6 = por %p179_p5, %p178_p4 }
   0xc   :  { %p181_p7 = pnand %p180_p6, %p174_p3 }
   0xe   :  { %184 = shalt.err (!%p181_p7)
}
   0xf   :  { %19 = dma.hbm_to_vmem [thread:$0]  %s236_s1, 512, %s17_s10, [#allocation7]  }
  0x10   :  { %185 = dma.done.wait [#allocation7], 512  }
  0x11   :  { %186 = vsyncadd [#allocation7], 4294966784  ;;  %v188_v0 = vmov 0   ;;  %v37_v1 = vld [vmem:[#allocation6] sm:$0xff]  ;;  %v38_v2 = vld [vmem:[#allocation6 + $0x8] sm:$0xff]  ;;  %v32_v27 = vlaneseq  ;;  %vm135_vm5 = vcmask 7168  }
  0x12   :  { %148 = vset.pattern.permute.xlu1 %v188_v0  ;;  %147 = vset.pattern.permute.xlu0 %v188_v0  ;;  %v40_v3 = vld [vmem:[#allocation6 + $0x10] sm:$0xff]  ;;  %v39_v4 = vmax.f32 %v37_v1, %v38_v2  ;;  %v219_v5 = vld [vmem:[%s235_s0] sm:$0xff]  ;;  %v221_v6 = vld [vmem:[#allocation6 + $0x18] sm:$0xff]  ;;  %v75_v44 = vadd.f32 %v38_v2, %v37_v1 }
  0x13   :  { %v142_v7 = vadd.s32 4294967168, %v219_v5  ;;  %v143_v9 = vadd.s32 4294967040, %v219_v5  ;;  %v144_v12 = vadd.s32 4294966912, %v219_v5  ;;  %v33_v33 = vand.u32 127, %v32_v27 }
  0x14   :  { %v41_v8 = vmax.f32 %v39_v4, %v40_v3  ;;  %v87_v49 = vadd.f32 %v75_v44, %v40_v3  ;;  %vm133_vm4 = vcmp.eq.s32.totalorder %v219_v5, 4294967196 }
  0x15   :  { %70 = vperm.xlu1 %148, %v142_v7  }
  0x16   :  { %v43_v10 = vmax.f32 %v41_v8, %v221_v6  ;;  %v99_v53 = vadd.f32 %v87_v49, %v221_v6 }
  0x18   :  { %v45_v11 = vmax.f32 %v43_v10, -1e+30 }
  0x19   :  { %82 = vperm.xlu1 %148, %v143_v9  }
  0x1a   :  { %108 = vmax.xlane.f32.xlu0 %v45_v11  ;;  %v47_v13 = vsub.f32 -1e+30, %v45_v11  ;;  %v53_v15 = vsub.f32 %v37_v1, %v45_v11  ;;  %v64_v17 = vsub.f32 %v38_v2, %v45_v11  ;;  %v76_v19 = vsub.f32 %v40_v3, %v45_v11 }
  0x1b   :  { %v88_v21 = vsub.f32 %v221_v6, %v45_v11 }
  0x1c   :  { %v48_v14 = vmul.f32 1.442695, %v47_v13  ;;  %v54_v16 = vmul.f32 1.442695, %v53_v15  ;;  %v65_v18 = vmul.f32 1.442695, %v64_v17 }
  0x1d   :  { %94 = vperm.xlu1 %148, %v144_v12   ;;  %v77_v20 = vmul.f32 1.442695, %v76_v19  ;;  %v89_v24 = vmul.f32 1.442695, %v88_v21 }
  0x1e   :  { %149 = vpow2.f32 %v48_v14 }
  0x1f   :  { %151 = vpow2.f32 %v54_v16 }
  0x20   :  { %153 = vpow2.f32 %v65_v18 }
  0x21   :  { %155 = vpow2.f32 %v77_v20 }
  0x22   :  { %157 = vpow2.f32 %v89_v24 }
  0x28   :  { %v150_v22 = vpop.eup %149 }
  0x29   :  { %v50_v25 = vmul.f32 0.0, %v150_v22  ;;  %v152_v26 = vpop.eup %151 }
  0x2a   :  { %v154_v31 = vpop.eup %153 }
  0x2b   :  { %v56_v30 = vadd.f32 %v152_v26, %v50_v25  ;;  %v156_v36 = vpop.eup %155 }
  0x2c   :  { %v158_v41 = vpop.eup %157 }
  0x2d   :  { %v67_v35 = vadd.f32 %v154_v31, %v56_v30 }
  0x2f   :  { %v79_v40 = vadd.f32 %v156_v36, %v67_v35 }
  0x30   :  { %58 = vperm.xlu0 %147, %v219_v5  }
  0x31   :  { %v91_v46 = vadd.f32 %v158_v41, %v79_v40 }
  0x94   :  { %v71_v23 = vpop.permute.xlu1 %70 }
  0x95   :  { %vm72_vm0 = vcmp.eq.s32.totalorder %v33_v33, %v71_v23 }
  0x96   :  { %v73_v38 = vsel %vm72_vm0, %v38_v2, 0.0 }
  0x98   :  { %v83_v29 = vpop.permute.xlu1 %82 }
  0x99   :  { %vm84_vm1 = vcmp.eq.s32.totalorder %v33_v33, %v83_v29 }
  0x9a   :  { %v85_v43 = vsel %vm84_vm1, %v40_v3, 0.0 }
  0x9c   :  { %v95_v37 = vpop.permute.xlu1 %94 }
  0x9d   :  { %vm96_vm3 = vcmp.eq.s32.totalorder %v33_v33, %v95_v37 }
  0x9e   :  { %v97_v47 = vsel %vm96_vm3, %v221_v6, 0.0 }
  0xa7   :  { %v109_v28 = vpop.xlane.xlu0 %108 }
  0xa8   :  { %v111_v32 = vsub.f32 %v45_v11, %v109_v28 }
  0xaa   :  { %v112_v34 = vmul.f32 1.442695, %v111_v32 }
  0xac   :  { %159 = vpow2.f32 %v112_v34 }
  0xaf   :  { %v59_v39 = vpop.permute.xlu0 %58 }
  0xb0   :  { %vm60_vm2 = vcmp.eq.s32.totalorder %v33_v33, %v59_v39 }
  0xb1   :  { %v61_v42 = vsel %vm60_vm2, %v37_v1, 0.0 }
  0xb2   :  { %v74_v45 = vadd.f32 %v73_v38, %v61_v42 }
  0xb4   :  { %v86_v48 = vadd.f32 %v85_v43, %v74_v45 }
  0xb6   :  { %v160_v50 = vpop.eup %159  ;;  %v98_v51 = vadd.f32 %v97_v47, %v86_v48 }
  0xb7   :  { %v114_v52 = vmul.f32 %v160_v50, %v91_v46 }
  0xb8   :  { %121 = vadd.xlane.f32.xlu0 %v98_v51 }
  0xb9   :  { %115 = vadd.xlane.f32.xlu1 %v114_v52 }
  0xbd   :  { %129 = vadd.xlane.f32.xlu1 %v99_v53 }
 0x145   :  { %v122_v57 = vpop.xlane.xlu0 %121 }
 0x146   :  { %v116_v54 = vpop.xlane.xlu1 %115  ;;  %v123_v60 = vmul.f32 0.9, %v122_v57 }
 0x147   :  { %161 = vlog2.f32 %v116_v54 }
 0x14a   :  { %v130_v59 = vpop.xlane.xlu1 %129 }
 0x14b   :  { %v131_v0 = vmul.f32 0.0001953125, %v130_v59 }
 0x151   :  { %v162_v55 = vpop.eup %161 }
 0x152   :  { %v118_v56 = vmul.f32 0.6931472, %v162_v55 }
 0x154   :  { %v119_v58 = vadd.f32 %v118_v56, %v109_v28 }
 0x156   :  { %v125_v61 = vmul.f32 0.0001, %v119_v58  ;;  %v124_v62 = vsub.f32 %v119_v58, %v123_v60 }
 0x158   :  { %v126_v63 = vmul.f32 %v125_v61, %v119_v58 }
 0x15a   :  { %v127_v1 = vadd.f32 %v126_v63, %v124_v62 }
 0x15c   :  { %v132_v2 = vsub.f32 %v127_v1, %v131_v0 }
 0x15e   :  { %v134_v3 = vsel %vm133_vm4, 0.0, %v132_v2 }
 0x15f   :  { %136 = vst.msk [vmem:[%s237_s2] sm:$0xff] %vm135_vm5, %v134_v3 }
 0x160   :  { %141 = vsyncpa [#allocation7], 1 }

</bundles_post_ra>
